<compile_context>
chip_gen: v7x
topology: tpu7x:2x2x1
jax: 0.10.0
libtpu: 0.0.40
codegen_flags: <defaults>
</compile_context>

<pallas_src>
import functools
from math import log

import jax
import jax.numpy as jnp
from jax.experimental import pallas as pl
from jax.experimental.pallas import tpu as pltpu


def _lif_kernel(cur_ref, v_ref, scale_ref, spike_ref, vtmp_ref, vnew_ref,
                *, threshold, vrest, r):
    cur = cur_ref[...].astype(jnp.float32)      # [TR, TL]
    v_prev = v_ref[...].astype(jnp.float32)     # [TR, TL]
    scale = scale_ref[...]                      # [TR, TL], = dt / tau, precomputed f32

    # v += dt/tau * (r*current - (v - vrest))
    v = v_prev + scale * (r * cur - (v_prev - vrest))

    fired = (v - threshold) > 0.0               # Heaviside fwd of the surrogate

    spike_ref[...] = fired.astype(spike_ref.dtype)
    vtmp_ref[...] = v.astype(vtmp_ref.dtype)
    # reset_mechanism == 'zero': v * (1 - spike)  ==  where(fired, 0, v)
    vnew_ref[...] = jnp.where(fired, 0.0, v).astype(vnew_ref.dtype)


def lif_forward(current, w, v, *, dt=0.01, min_tau=0.1, threshold=1.0,
                vrest=0.0, r=1.0, lane_tile=2048, row_tile_cap=64):
    """One LIF step.

    current: [B, *in_size]   synaptic current
    w:       [*in_size]      trainable tau parameter (pre-sigmoid)
    v:       [B, *in_size]   previous membrane potential state
    returns: (spike, v_tmp, v_new), each [B, *in_size], dtype of `current`
    """
    orig_shape = current.shape
    B = orig_shape[0]
    in_size = orig_shape[1:]

    # Fold batch with the leading feature dim into the sublane (row) axis so
    # vregs stay >= 8 sublanes even for tiny batches; remaining feature dims
    # form the lane-dense last axis.
    if len(in_size) >= 2:
        period = in_size[0]
        lanes = 1
        for s in in_size[1:]:
            lanes *= s
    else:
        period = 1
        lanes = in_size[0] if in_size else 1
    rows = B * period

    cur2 = current.reshape(rows, lanes)
    v2 = v.reshape(rows, lanes)

    # Hoisted parameter transform (tiny: |in_size| elements, exact f32).
    scale = dt / (min_tau + jax.nn.sigmoid(w.astype(jnp.float32)))
    scale = scale.reshape(period, lanes)

    # Tile choice: lane-dense blocks, rows a multiple of `period` so the
    # per-channel scale pattern repeats exactly inside every row tile.
    TL = min(lanes, lane_tile)
    nb = max(1, min(B, max(1, row_tile_cap // period)))
    TR = min(rows, nb * period)                 # always a multiple of `period`

    # Replicate the (tiny) per-channel scale over one row tile; the same block
    # is reused for every row tile via its index_map.
    scale_tile = jnp.tile(scale, (TR // period, 1))       # [TR, lanes]

    grid = (pl.cdiv(rows, TR), pl.cdiv(lanes, TL))
    out_dtype = current.dtype
    out_sds = jax.ShapeDtypeStruct((rows, lanes), out_dtype)

    kernel = functools.partial(_lif_kernel, threshold=float(threshold),
                               vrest=float(vrest), r=float(r))

    itemsize_in = jnp.dtype(current.dtype).itemsize
    itemsize_out = jnp.dtype(out_dtype).itemsize
    cost = pl.CostEstimate(
        flops=6 * rows * lanes,
        transcendentals=0,
        bytes_accessed=(2 * rows * lanes * itemsize_in
                        + 3 * rows * lanes * itemsize_out
                        + scale_tile.size * 4),
    )

    spike2, vtmp2, vnew2 = pl.pallas_call(
        kernel,
        out_shape=(out_sds, out_sds, out_sds),
        grid_spec=pltpu.PrefetchScalarGridSpec(
            num_scalar_prefetch=0,
            grid=grid,
            in_specs=[
                pl.BlockSpec((TR, TL), lambda i, j: (i, j)),   # current
                pl.BlockSpec((TR, TL), lambda i, j: (i, j)),   # v (state)
                pl.BlockSpec((TR, TL), lambda i, j: (0, j)),   # dt/tau (shared)
            ],
            out_specs=[
                pl.BlockSpec((TR, TL), lambda i, j: (i, j)),   # spike
                pl.BlockSpec((TR, TL), lambda i, j: (i, j)),   # v_tmp
                pl.BlockSpec((TR, TL), lambda i, j: (i, j)),   # v_new
            ],
        ),
        compiler_params=pltpu.CompilerParams(
            dimension_semantics=("parallel", "parallel")),
        cost_estimate=cost,
    )(cur2, v2, scale_tile)

    return (spike2.reshape(orig_shape),
            vtmp2.reshape(orig_shape),
            vnew2.reshape(orig_shape))


if __name__ == "__main__":
    # Module hyperparameters (mirrors LIF.__init__ defaults).
    dt = 0.01
    init_tau = 0.5
    min_tau = 0.1
    threshold = 1.0
    vrest = 0.0
    r = 1.0

    # in_size = (C, H, W); current is [B, C, H, W].
    B, C, H, W = 2, 4, 16, 16
    in_size = (C, H, W)

    # Deterministic parameter init: w = init_w * ones(in_size)
    init_w = -log(1.0 / (init_tau - min_tau) - 1.0)
    w = init_w * jnp.ones(in_size, dtype=jnp.float32)

    # Deterministic example input; scale so some neurons cross threshold.
    key = jax.random.PRNGKey(0)
    current = 100.0 * jax.random.normal(key, (B, C, H, W), dtype=jnp.float32)

    # Initial membrane potential v = 0.0 (init_voltage()).
    v0 = jnp.zeros((B, C, H, W), dtype=jnp.float32)

    spike, v_tmp, v_new = lif_forward(
        current, w, v0, dt=dt, min_tau=min_tau,
        threshold=threshold, vrest=vrest, r=r)
    jax.block_until_ready((spike, v_tmp, v_new))

    # Pure-JAX reference check of the forward semantics.
    tau_ref = min_tau + jax.nn.sigmoid(w)[None]
    v_ref = v0 + dt / tau_ref * (-(v0 - vrest) + r * current)
    spike_ref = (v_ref - threshold > 0).astype(jnp.float32)
    vnew_ref = v_ref * (1.0 - spike_ref)
    assert jnp.allclose(spike, spike_ref)
    assert jnp.allclose(v_tmp, v_ref, atol=1e-5, rtol=1e-5)
    assert jnp.allclose(v_new, vnew_ref, atol=1e-5, rtol=1e-5)

    print("KERNEL_OK")
</pallas_src>

<mosaic_0001>
module attributes {stable_mosaic.version = 11 : i64} {
  func.func @_lif_kernel(%arg0: i32, %arg1: i32, %arg2: memref<8x256xf32, #tpu.memory_space<vmem>>, %arg3: memref<8x256xf32, #tpu.memory_space<vmem>>, %arg4: memref<8x256xf32, #tpu.memory_space<vmem>>, %arg5: memref<8x256xf32, #tpu.memory_space<vmem>>, %arg6: memref<8x256xf32, #tpu.memory_space<vmem>>, %arg7: memref<8x256xf32, #tpu.memory_space<vmem>>) attributes {dimension_semantics = [#tpu.dimension_semantics<parallel>, #tpu.dimension_semantics<parallel>], iteration_bounds = array<i64: 1, 1>, scalar_prefetch = 0 : i64, scratch_operands = 0 : i64, tpu.core_type = #tpu.core_type<tc>, window_params = [{transform_indices = @transform_0, window_bounds = array<i64: 8, 256>}, {transform_indices = @transform_1, window_bounds = array<i64: 8, 256>}, {transform_indices = @transform_2, window_bounds = array<i64: 8, 256>}, {transform_indices = @transform_3, window_bounds = array<i64: 8, 256>}, {transform_indices = @transform_4, window_bounds = array<i64: 8, 256>}, {transform_indices = @transform_5, window_bounds = array<i64: 8, 256>}]} {
    %c0 = arith.constant 0 : index
    %c0_0 = arith.constant 0 : index
    %0 = vector.load %arg2[%c0, %c0_0] : memref<8x256xf32, #tpu.memory_space<vmem>>, vector<8x256xf32>
    %c0_1 = arith.constant 0 : index
    %c0_2 = arith.constant 0 : index
    %1 = vector.load %arg3[%c0_1, %c0_2] : memref<8x256xf32, #tpu.memory_space<vmem>>, vector<8x256xf32>
    %c0_3 = arith.constant 0 : index
    %c0_4 = arith.constant 0 : index
    %2 = vector.load %arg4[%c0_3, %c0_4] : memref<8x256xf32, #tpu.memory_space<vmem>>, vector<8x256xf32>
    %cst = arith.constant 1.000000e+00 : f32
    %3 = vector.broadcast %cst : f32 to vector<8x256xf32>
    %4 = arith.mulf %3, %0 : vector<8x256xf32>
    %cst_5 = arith.constant 0.000000e+00 : f32
    %5 = vector.broadcast %cst_5 : f32 to vector<8x256xf32>
    %6 = arith.subf %1, %5 : vector<8x256xf32>
    %7 = arith.subf %4, %6 : vector<8x256xf32>
    %8 = arith.mulf %2, %7 : vector<8x256xf32>
    %9 = arith.addf %1, %8 : vector<8x256xf32>
    %cst_6 = arith.constant 1.000000e+00 : f32
    %10 = vector.broadcast %cst_6 : f32 to vector<8x256xf32>
    %11 = arith.subf %9, %10 : vector<8x256xf32>
    %cst_7 = arith.constant 0.000000e+00 : f32
    %12 = vector.broadcast %cst_7 : f32 to vector<8x256xf32>
    %13 = arith.cmpf ogt, %11, %12 : vector<8x256xf32>
    %14 = arith.extui %13 : vector<8x256xi1> to vector<8x256xi32>
    %15 = arith.sitofp %14 : vector<8x256xi32> to vector<8x256xf32>
    %c0_8 = arith.constant 0 : index
    %c0_9 = arith.constant 0 : index
    %16 = vector.load %arg5[%c0_8, %c0_9] : memref<8x256xf32, #tpu.memory_space<vmem>>, vector<8x256xf32>
    tpu.vector_store %arg5[%c0_8, %c0_9], %15 {strides = array<i32>} : memref<8x256xf32, #tpu.memory_space<vmem>>, vector<8x256xf32>,
    %c0_10 = arith.constant 0 : index
    %c0_11 = arith.constant 0 : index
    %17 = vector.load %arg6[%c0_10, %c0_11] : memref<8x256xf32, #tpu.memory_space<vmem>>, vector<8x256xf32>
    tpu.vector_store %arg6[%c0_10, %c0_11], %9 {strides = array<i32>} : memref<8x256xf32, #tpu.memory_space<vmem>>, vector<8x256xf32>,
    %cst_12 = arith.constant 0.000000e+00 : f32
    %18 = vector.broadcast %cst_12 : f32 to vector<8x256xf32>
    %19 = arith.select %13, %18, %9 : vector<8x256xi1>, vector<8x256xf32>
    %c0_13 = arith.constant 0 : index
    %c0_14 = arith.constant 0 : index
    %20 = vector.load %arg7[%c0_13, %c0_14] : memref<8x256xf32, #tpu.memory_space<vmem>>, vector<8x256xf32>
    tpu.vector_store %arg7[%c0_13, %c0_14], %19 {strides = array<i32>} : memref<8x256xf32, #tpu.memory_space<vmem>>, vector<8x256xf32>,
    return
  }
  func.func @transform_0(%arg0: i32, %arg1: i32) -> (i32, i32) {
    %c0_i32 = arith.constant 0 : i32
    return %arg0, %arg1 : i32, i32
  }
  func.func @transform_1(%arg0: i32, %arg1: i32) -> (i32, i32) {
    %c0_i32 = arith.constant 0 : i32
    return %arg0, %arg1 : i32, i32
  }
  func.func @transform_2(%arg0: i32, %arg1: i32) -> (i32, i32) {
    %c0_i32 = arith.constant 0 : i32
    %c0_i32_0 = arith.constant 0 : i32
    return %c0_i32, %arg1 : i32, i32
  }
  func.func @transform_3(%arg0: i32, %arg1: i32) -> (i32, i32) {
    %c0_i32 = arith.constant 0 : i32
    return %arg0, %arg1 : i32, i32
  }
  func.func @transform_4(%arg0: i32, %arg1: i32) -> (i32, i32) {
    %c0_i32 = arith.constant 0 : i32
    return %arg0, %arg1 : i32, i32
  }
  func.func @transform_5(%arg0: i32, %arg1: i32) -> (i32, i32) {
    %c0_i32 = arith.constant 0 : i32
    return %arg0, %arg1 : i32, i32
  }
}

</mosaic_0001>

<bundles_post_ra>
// kernel: tpu_custom_call.1
= control target key start
LH: loop header
LB: loop body
LE: loop exit
PB: predicated region body
PF: predicated region fallthrough
CT: control target
= control target key end

     0   :  { %11 = vsyncpa [#allocation3], 0  ;;  %s387_s0 = inlined_call_operand.hbm [shape: f32[8,256], index: 0, kind: input, shape index: {}]   ;;  %s388_s1 = inlined_call_operand.hbm [shape: f32[8,256], index: 1, kind: input, shape index: {}]   ;;  %s389_s2 = inlined_call_operand.hbm [shape: f32[8,256], index: 2, kind: input, shape index: {}]   ;;  %s390_s3 = inlined_call_operand.hbm [shape: f32[8,256], index: 3, kind: output, shape index: {0}]   ;;  %s391_s4 = inlined_call_operand.hbm [shape: f32[8,256], index: 4, kind: output, shape index: {1}]   ;;  %s392_s5 = inlined_call_operand.hbm [shape: f32[8,256], index: 5, kind: output, shape index: {2}]  }
   0x1   :  { %12 = vsyncpa [#allocation6], 0 }
   0x2   :  { %13 = vsyncpa [#allocation4], 0 }
   0x3   :  { %14 = vsyncpa [#allocation10], 0  ;;  %s276_s18 = smov [#allocation5]   ;;  %s277_s20 = smov [#allocation2]  }
   0x4   :  { %s31_s19 = sshll.u32 %s276_s18, 4  ;;  %s21_s21 = sshll.u32 %s277_s20, 4  ;;  %s32_s19 = int_to_ptr.vmem [resolvable:$true] %s31_s19  ;;  %s22_s21 = int_to_ptr.vmem [resolvable:$true] %s21_s21 }
   0x5   :  { %s136_s24 = scalar_lea.hbm %s388_s1, 256 }
   0x6   :  { %p137_p0 = scmp.ne.s32.totalorder %s388_s1, %s136_s24  ;;  %p140_p1 = scmp.lt.u32.totalorder %s136_s24, %s388_s1 }
   0x8   :  { %p142_p2 = pnand %p140_p1, %p137_p0 }
   0xa   :  { %145 = shalt.err (!%p142_p2)
}
   0xb   :  { %s146_s29 = scalar_lea.vmem %s32_s19, 256  ;;  %p151_p4 = scmp.lt.s32.totalorder %s32_s19, %s32_s19 }
   0xc   :  { %p147_p3 = scmp.ne.s32.totalorder %s32_s19, %s146_s29  ;;  %p152_p5 = scmp.lt.s32.totalorder %s146_s29, %s146_s29 }
   0xe   :  { %p153_p6 = por %p152_p5, %p151_p4 }
  0x10   :  { %p154_p7 = pnand %p153_p6, %p147_p3 }
  0x12   :  { %157 = shalt.err (!%p154_p7)
}
  0x13   :  { %34 = dma.hbm_to_vmem [thread:$0]  %s388_s1, 256, %s32_s19, [#allocation6]  }
  0x14   :  { %s158_s9 = scalar_lea.hbm %s387_s0, 256 }
  0x15   :  { %p159_p8 = scmp.ne.s32.totalorder %s387_s0, %s158_s9  ;;  %p162_p9 = scmp.lt.u32.totalorder %s158_s9, %s387_s0 }
  0x17   :  { %p164_p10 = pnand %p162_p9, %p159_p8 }
  0x19   :  { %167 = shalt.err (!%p164_p10)
}
  0x1a   :  { %s168_s14 = scalar_lea.vmem %s22_s21, 256  ;;  %p173_p12 = scmp.lt.s32.totalorder %s22_s21, %s22_s21 }
  0x1b   :  { %p169_p11 = scmp.ne.s32.totalorder %s22_s21, %s168_s14  ;;  %p174_p13 = scmp.lt.s32.totalorder %s168_s14, %s168_s14 }
  0x1d   :  { %p175_p0 = por %p174_p13, %p173_p12 }
  0x1f   :  { %p176_p1 = pnand %p175_p0, %p169_p11 }
  0x21   :  { %179 = shalt.err (!%p176_p1)
}
  0x22   :  { %24 = dma.hbm_to_vmem [thread:$0]  %s387_s0, 256, %s22_s21, [#allocation3]  }
  0x23   :  { %s278_s16 = smov [#allocation7]   ;;  %s180_s20 = scalar_lea.hbm %s389_s2, 256 }
  0x24   :  { %s41_s17 = sshll.u32 %s278_s16, 4  ;;  %p181_p2 = scmp.ne.s32.totalorder %s389_s2, %s180_s20  ;;  %s42_s17 = int_to_ptr.vmem [resolvable:$true] %s41_s17 }
  0x25   :  { %p184_p3 = scmp.lt.u32.totalorder %s180_s20, %s389_s2 }
  0x27   :  { %p186_p4 = pnand %p184_p3, %p181_p2 }
  0x29   :  { %189 = shalt.err (!%p186_p4)
}
  0x2a   :  { %s190_s26 = scalar_lea.vmem %s42_s17, 256  ;;  %p195_p6 = scmp.lt.s32.totalorder %s42_s17, %s42_s17 }
  0x2b   :  { %p191_p5 = scmp.ne.s32.totalorder %s42_s17, %s190_s26  ;;  %p196_p7 = scmp.lt.s32.totalorder %s190_s26, %s190_s26 }
  0x2d   :  { %p197_p8 = por %p196_p7, %p195_p6 }
  0x2f   :  { %p198_p9 = pnand %p197_p8, %p191_p5 }
  0x31   :  { %201 = shalt.err (!%p198_p9)
}
  0x32   :  { %44 = dma.hbm_to_vmem [thread:$0]  %s389_s2, 256, %s42_s17, [#allocation6]  }
  0x33   :  { %268 = dma.done.wait [#allocation3], 256  }
  0x34   :  { %269 = vsyncadd [#allocation3], 4294967040 }
  0x35   :  { %270 = dma.done.wait [#allocation6], 512  }
  0x36   :  { %271 = vsyncadd [#allocation6], 4294966784  ;;  %v54_v0 = vld [vmem:[#allocation2] sm:$0xff]  ;;  %v56_v1 = vld [vmem:[#allocation5] sm:$0xff]  ;;  %s279_s27 = smov [#allocation9]   ;;  %s280_s2 = smov [#allocation8]  }
  0x37   :  { %v58_v2 = vld [vmem:[#allocation7] sm:$0xff]  ;;  %v60_v3 = vsub.f32 %v54_v0, %v56_v1  ;;  %v55_v4 = vld [vmem:[#allocation2 + $0x8] sm:$0xff]  ;;  %v57_v5 = vld [vmem:[#allocation5 + $0x8] sm:$0xff]  ;;  %s98_s28 = sshll.u32 %s279_s27, 4  ;;  %s88_s29 = sshll.u32 %s280_s2, 4  ;;  %s99_s28 = int_to_ptr.vmem [resolvable:$true] %s98_s28  ;;  %s89_s29 = int_to_ptr.vmem [resolvable:$true] %s88_s29 }
  0x38   :  { %v59_v6 = vld [vmem:[#allocation7 + $0x8] sm:$0xff]  ;;  %v61_v7 = vsub.f32 %v55_v4, %v57_v5  ;;  %s281_s30 = smov [#allocation11]   ;;  %s202_s7 = scalar_lea.vmem %s99_s28, 256 }
  0x39   :  { %v62_v8 = vmul.f32 %v60_v3, %v58_v2  ;;  %s108_s6 = sshll.u32 %s281_s30, 4  ;;  %p203_p10 = scmp.ne.s32.totalorder %s99_s28, %s202_s7  ;;  %s109_s6 = int_to_ptr.vmem [resolvable:$true] %s108_s6 }
  0x3a   :  { %v63_v9 = vmul.f32 %v61_v7, %v59_v6  ;;  %p207_p11 = scmp.lt.s32.totalorder %s99_s28, %s99_s28  ;;  %p208_p12 = scmp.lt.s32.totalorder %s202_s7, %s202_s7 }
  0x3b   :  { %v64_v10 = vadd.f32 %v62_v8, %v56_v1 }
  0x3c   :  { %v65_v11 = vadd.f32 %v63_v9, %v57_v5  ;;  %p209_p13 = por %p208_p12, %p207_p11 }
  0x3d   :  { %76 = vst [vmem:[#allocation9] sm:$0xff] %v64_v10  ;;  %v125_v12 = vadd.f32 -1.0, %v64_v10 }
  0x3e   :  { %77 = vst [vmem:[#allocation9 + $0x8] sm:$0xff] %v65_v11  ;;  %v126_v13 = vadd.f32 -1.0, %v65_v11  ;;  %p210_p0 = pnand %p209_p13, %p203_p10 }
  0x3f   :  { %vm68_vm0 = vcmp.gt.f32.partialorder %v125_v12, 0.0 }
  0x40   :  { %213 = shalt.err (!%p210_p0)
}
  0x41   :  { %s214_s10 = scalar_lea.hbm %s391_s4, 256 }
  0x42   :  { %p215_p1 = scmp.ne.s32.totalorder %s391_s4, %s214_s10  ;;  %p218_p2 = scmp.lt.u32.totalorder %s214_s10, %s391_s4 }
  0x44   :  { %p220_p3 = pnand %p218_p2, %p215_p1 }
  0x46   :  { %223 = shalt.err (!%p220_p3)
}
  0x47   :  { %101 = dma.vmem_to_hbm [thread:$0]  %s99_s28, 256, %s391_s4, [#allocation10]   ;;  %v282_v14 = vmov 0.0   ;;  %vm69_vm1 = vcmp.gt.f32.partialorder %v126_v13, 0.0  ;;  %v78_v16 = vsel %vm68_vm0, 0.0, %v64_v10 }
  0x48   :  { %v127_v15 = vsel %vm68_vm0, 1.0, %v282_v14  ;;  %v128_v17 = vsel %vm69_vm1, 1.0, %v282_v14  ;;  %80 = vst [vmem:[#allocation11] sm:$0xff] %v78_v16  ;;  %v79_v18 = vsel %vm69_vm1, 0.0, %v65_v11  ;;  %s224_s16 = scalar_lea.vmem %s89_s29, 256  ;;  %p229_p5 = scmp.lt.s32.totalorder %s89_s29, %s89_s29 }
  0x49   :  { %74 = vst [vmem:[#allocation8] sm:$0xff] %v127_v15  ;;  %75 = vst [vmem:[#allocation8 + $0x8] sm:$0xff] %v128_v17  ;;  %p225_p4 = scmp.ne.s32.totalorder %s89_s29, %s224_s16  ;;  %p230_p6 = scmp.lt.s32.totalorder %s224_s16, %s224_s16 }
  0x4a   :  { %81 = vst [vmem:[#allocation11 + $0x8] sm:$0xff] %v79_v18 }
  0x4b   :  { %p231_p7 = por %p230_p6, %p229_p5 }
  0x4d   :  { %p232_p8 = pnand %p231_p7, %p225_p4 }
  0x4f   :  { %235 = shalt.err (!%p232_p8)
}
  0x50   :  { %s236_s18 = scalar_lea.hbm %s390_s3, 256 }
  0x51   :  { %p237_p9 = scmp.ne.s32.totalorder %s390_s3, %s236_s18  ;;  %p240_p10 = scmp.lt.u32.totalorder %s236_s18, %s390_s3 }
  0x53   :  { %p242_p11 = pnand %p240_p10, %p237_p9 }
  0x55   :  { %245 = shalt.err (!%p242_p11)
}
  0x56   :  { %91 = dma.vmem_to_hbm [thread:$0]  %s89_s29, 256, %s390_s3, [#allocation4]  }
  0x57   :  { %s246_s26 = scalar_lea.vmem %s109_s6, 256  ;;  %p251_p13 = scmp.lt.s32.totalorder %s109_s6, %s109_s6 }
  0x58   :  { %p247_p12 = scmp.ne.s32.totalorder %s109_s6, %s246_s26  ;;  %p252_p0 = scmp.lt.s32.totalorder %s246_s26, %s246_s26 }
  0x5a   :  { %p253_p1 = por %p252_p0, %p251_p13 }
  0x5c   :  { %p254_p2 = pnand %p253_p1, %p247_p12 }
  0x5e   :  { %257 = shalt.err (!%p254_p2)
}
  0x5f   :  { %s258_s27 = scalar_lea.hbm %s392_s5, 256 }
  0x60   :  { %p259_p3 = scmp.ne.s32.totalorder %s392_s5, %s258_s27  ;;  %p262_p4 = scmp.lt.u32.totalorder %s258_s27, %s392_s5 }
  0x62   :  { %p264_p5 = pnand %p262_p4, %p259_p3 }
  0x64   :  { %267 = shalt.err (!%p264_p5)
}
  0x65   :  { %111 = dma.vmem_to_hbm [thread:$0]  %s109_s6, 256, %s392_s5, [#allocation10]  }
  0x66   :  { %272 = dma.done.wait [#allocation4], 256  }
  0x67   :  { %273 = vsyncadd [#allocation4], 4294967040 }
  0x68   :  { %274 = dma.done.wait [#allocation10], 512  }
  0x69   :  { %275 = vsyncadd [#allocation10], 4294966784 }
  0x6a   :  { %121 = vsyncpa [#allocation3], 1 }
  0x6b   :  { %122 = vsyncpa [#allocation6], 1 }
  0x6c   :  { %123 = vsyncpa [#allocation4], 1 }
  0x6d   :  { %124 = vsyncpa [#allocation10], 1 }

</bundles_post_ra>
